<compile_context>
chip_gen: v6e
topology: v6e:2x2x1
jax: 0.10.0
libtpu: 0.0.40
codegen_flags: <defaults>
</compile_context>

<pallas_src>
import jax
import jax.numpy as jnp
import numpy as np
from jax.experimental import pallas as pl
from jax.experimental.pallas import tpu as pltpu

_NEG_BIG = -1e30          # bias for padded label lanes -> exp underflows to 0
_STATS_LANES = 128        # lane-dense packed (cos, ce) output width


def _round_up(x, m):
    return ((x + m - 1) // m) * m


def _make_kernel(d, fuse, want_logits, dot_dtype):
    """Kernel factory. d = embedding dim; fuse = single K=3D dot (small D)."""

    def kernel(a_ref, b_ref, lbl_ref, w_ref, bias_ref, *out_refs):
        if want_logits:
            logits_ref, stats_ref = out_refs
        else:
            (stats_ref,) = out_refs

        # Elementwise math in f32 (v5e has no bf16 VPU/EUP path).
        a = a_ref[...].astype(jnp.float32)            # (TB, D)
        b = b_ref[...].astype(jnp.float32)            # (TB, D)
        lbl = lbl_ref[...]                            # (TB, 1) int32

        # --- cosine similarity per row (F.cosine_similarity, eps=1e-8) ------
        # cos = dot * rsqrt(max(||a||^2, eps^2) * max(||b||^2, eps^2))
        eps2 = jnp.float32(1e-8) * jnp.float32(1e-8)
        dot = jnp.sum(a * b, axis=-1, keepdims=True)
        na2 = jnp.sum(a * a, axis=-1, keepdims=True)
        nb2 = jnp.sum(b * b, axis=-1, keepdims=True)
        inv = jax.lax.rsqrt(jnp.maximum(na2, eps2) * jnp.maximum(nb2, eps2))
        cos = dot * inv                               # (TB, 1)

        # --- classifier: logits = [a, b, |a-b|] @ W + bias -------------------
        diff = jnp.abs(a - b)
        if fuse:
            # Small D: one K=3D MXU dot amortizes fill/drain vs 3 shallow dots.
            feats = jnp.concatenate([a, b, diff], axis=-1).astype(dot_dtype)
            logits = jnp.dot(feats, w_ref[...],
                             preferred_element_type=jnp.float32)
        else:
            # Large D: split-weight form avoids the (TB, 3D) concat copy.
            ad = a.astype(dot_dtype)
            bd = b.astype(dot_dtype)
            dd = diff.astype(dot_dtype)
            logits = jnp.dot(ad, w_ref[0:d, :],
                             preferred_element_type=jnp.float32)
            logits = logits + jnp.dot(bd, w_ref[d:2 * d, :],
                                      preferred_element_type=jnp.float32)
            logits = logits + jnp.dot(dd, w_ref[2 * d:3 * d, :],
                                      preferred_element_type=jnp.float32)
        logits = logits + bias_ref[...]               # (TB, LP); pad lanes ~ -1e30
        if want_logits:
            logits_ref[...] = logits

        # --- per-row cross entropy (assumes 0 <= label < num_labels) ---------
        m = jnp.max(logits, axis=-1, keepdims=True)
        z = logits - m
        lse = jnp.log(jnp.sum(jnp.exp(z), axis=-1, keepdims=True))
        col = jax.lax.broadcasted_iota(jnp.int32, logits.shape, 1)
        picked = jnp.sum(jnp.where(col == lbl, z, 0.0), axis=-1, keepdims=True)
        ce = lse - picked                             # (TB, 1)

        # Pack (cos, ce) into one lane-dense output: lane 0 = cos, lane 1 = ce.
        tb, lanes = stats_ref.shape
        lane = jax.lax.broadcasted_iota(jnp.int32, (tb, lanes), 1)
        stats_ref[...] = (jnp.where(lane == 0, cos, 0.0)
                          + jnp.where(lane == 1, ce, 0.0))

    return kernel


def multi_task_output(rep_a, rep_b, labels, w, bias, *, block_b=None,
                      dot_dtype=jnp.bfloat16, return_logits=True):
    """Returns (loss, logits, cos_sim). logits is None when return_logits=False.

    rep_a / rep_b may be shipped in bf16 by the caller to halve the activation
    HBM read; the in-kernel cosine/softmax math is always done in f32.
    """
    B, D = rep_a.shape
    L = w.shape[1]
    LP = _round_up(L, 128)                            # lane-dense label width

    # Classifier params: rows [0:D]=a, [D:2D]=b, [2D:3D]=|a-b| (torch.cat order).
    w_p = w.astype(jnp.float32)
    bias_p = bias.astype(jnp.float32)
    if LP != L:
        w_p = jnp.pad(w_p, ((0, 0), (0, LP - L)))
        bias_p = jnp.pad(bias_p, (0, LP - L), constant_values=_NEG_BIG)
    w_p = w_p.astype(dot_dtype)        # bf16 weights halve resident VMEM + HBM read
    bias2d = bias_p.reshape(1, LP)
    lbl2d = labels.reshape(-1, 1).astype(jnp.int32)

    act_bytes = jnp.dtype(rep_a.dtype).itemsize
    w_bytes = jnp.dtype(dot_dtype).itemsize

    try:
        vmem_cap = int(pltpu.get_tpu_info().vmem_capacity_bytes)
    except Exception:                  # no info available -> smallest-gen budget
        vmem_cap = 64 << 20            # v7x per-core physical VMEM
    budget = (vmem_cap * 3) // 4       # leave headroom for compiler scratch

    # Batch tile: multiple of 8 sublanes; ensure >= 2 grid steps so both v7x
    # TensorCores get work (harmless per-step overhead on v5e/v6e).
    if block_b is None:
        block_b = min(512, _round_up(B, 8))
        if B >= 16:
            block_b = min(block_b, _round_up(-(-B // 2), 8))
    block_b = max(8, _round_up(block_b, 8))

    def vmem_need(tb):
        tile_in = 2 * tb * D * act_bytes + tb * 4                 # a, b, labels
        tile_out = tb * _STATS_LANES * 4 + (tb * LP * 4 if return_logits else 0)
        resident = 3 * D * LP * w_bytes + LP * 4                  # W, bias
        return 2 * (tile_in + tile_out) + 2 * resident            # 2 bufs each

    while block_b > 8 and vmem_need(block_b) > budget:
        block_b = max(8, _round_up(block_b // 2, 8))

    # Ragged last tile: rows are independent, OOB reads only feed rows whose
    # writes Pallas drops, so no wrapper-side padding copy is needed.
    n_tiles = -(-B // block_b)
    vmem_limit = int(min(budget, max(8 << 20, 2 * vmem_need(block_b))))

    kernel = _make_kernel(D, D <= 256, return_logits, dot_dtype)

    out_shape = []
    out_specs = []
    if return_logits:
        out_shape.append(jax.ShapeDtypeStruct((B, LP), jnp.float32))
        out_specs.append(pl.BlockSpec((block_b, LP), lambda i: (i, 0)))
    out_shape.append(jax.ShapeDtypeStruct((B, _STATS_LANES), jnp.float32))
    out_specs.append(pl.BlockSpec((block_b, _STATS_LANES), lambda i: (i, 0)))

    outs = pl.pallas_call(
        kernel,
        out_shape=tuple(out_shape),
        grid=(n_tiles,),
        in_specs=[
            pl.BlockSpec((block_b, D), lambda i: (i, 0)),         # rep_a tile
            pl.BlockSpec((block_b, D), lambda i: (i, 0)),         # rep_b tile
            pl.BlockSpec((block_b, 1), lambda i: (i, 0)),         # labels tile
            pl.BlockSpec((3 * D, LP), lambda i: (0, 0)),          # W (resident)
            pl.BlockSpec((1, LP), lambda i: (0, 0)),              # bias (resident)
        ],
        out_specs=tuple(out_specs),
        compiler_params=pltpu.CompilerParams(
            dimension_semantics=("parallel",),
            vmem_limit_bytes=vmem_limit),
    )(rep_a, rep_b, lbl2d, w_p, bias2d)

    if return_logits:
        logits_full, stats = outs
        logits = logits_full if LP == L else logits_full[:, :L]
    else:
        stats = outs[0]
        logits = None

    cos = stats[:, 0]
    ce = jnp.mean(stats[:, 1])
    tgt = labels.astype(jnp.float32).reshape(-1) - 1.0
    mse = jnp.mean((cos - tgt) ** 2)
    alpha = jnp.float32(0.5)
    loss = alpha * ce + (1.0 - alpha) * mse
    return loss, logits, cos


def _reference(rep_a, rep_b, labels, w, bias):
    """Pure-JAX reference matching the PyTorch forward."""
    dot = jnp.sum(rep_a * rep_b, axis=-1)
    na = jnp.sqrt(jnp.sum(rep_a * rep_a, axis=-1))
    nb = jnp.sqrt(jnp.sum(rep_b * rep_b, axis=-1))
    cos = dot / (jnp.maximum(na, 1e-8) * jnp.maximum(nb, 1e-8))
    mse = jnp.mean((cos - (labels.astype(jnp.float32) - 1.0)) ** 2)
    feats = jnp.concatenate([rep_a, rep_b, jnp.abs(rep_a - rep_b)], axis=1)
    logits = feats @ w + bias
    logp = jax.nn.log_softmax(logits, axis=-1)
    ce = -jnp.mean(jnp.take_along_axis(logp, labels[:, None], axis=1))
    return 0.5 * ce + 0.5 * mse, logits, cos


if __name__ == "__main__":
    B, D, L = 16, 32, 4        # batch, sentence_embedding_dimension, num_labels
    key = jax.random.PRNGKey(0)
    k_a, k_b, k_l, k_w, k_bias = jax.random.split(key, 5)

    rep_a = jax.random.normal(k_a, (B, D), dtype=jnp.float32)
    rep_b = jax.random.normal(k_b, (B, D), dtype=jnp.float32)
    labels = jax.random.randint(k_l, (B,), 0, L, dtype=jnp.int32)

    # nn.Linear(3*D, L) style deterministic init.
    bound = 1.0 / np.sqrt(3 * D)
    w = jax.random.uniform(k_w, (3 * D, L), jnp.float32, -bound, bound)
    bias = jax.random.uniform(k_bias, (L,), jnp.float32, -bound, bound)

    ref_loss, ref_logits, ref_cos = _reference(rep_a, rep_b, labels, w, bias)

    # 1) Exact path: f32 MXU dots, logits returned, 2-tile grid.
    loss, logits, cos = multi_task_output(rep_a, rep_b, labels, w, bias,
                                          block_b=8, dot_dtype=jnp.float32)
    jax.block_until_ready((loss, logits, cos))
    np.testing.assert_allclose(np.asarray(loss), np.asarray(ref_loss),
                               rtol=1e-5, atol=1e-5)
    np.testing.assert_allclose(np.asarray(logits), np.asarray(ref_logits),
                               rtol=1e-5, atol=1e-5)
    np.testing.assert_allclose(np.asarray(cos), np.asarray(ref_cos),
                               rtol=1e-5, atol=1e-5)

    # 2) Default fast path: bf16 MXU dots, loss-only (matches forward(labels=...)),
    #    ragged batch (B=13, block_b=8) exercises the no-pad masked last tile.
    Br = 13
    ref2_loss, _, ref2_cos = _reference(rep_a[:Br], rep_b[:Br], labels[:Br], w, bias)
    loss2, logits2, cos2 = multi_task_output(rep_a[:Br], rep_b[:Br], labels[:Br],
                                             w, bias, block_b=8,
                                             return_logits=False)
    jax.block_until_ready((loss2, cos2))
    assert logits2 is None
    np.testing.assert_allclose(np.asarray(cos2), np.asarray(ref2_cos),
                               rtol=1e-5, atol=1e-5)
    np.testing.assert_allclose(np.asarray(loss2), np.asarray(ref2_loss),
                               rtol=2e-2, atol=2e-2)   # bf16 MXU tolerance

    print("KERNEL_OK")
</pallas_src>

<mosaic_0001>
module attributes {stable_mosaic.version = 11 : i64} {
  func.func @kernel(%arg0: i32, %arg1: memref<8x32xf32, #tpu.memory_space<vmem>>, %arg2: memref<8x32xf32, #tpu.memory_space<vmem>>, %arg3: memref<8x1xi32, #tpu.memory_space<vmem>>, %arg4: memref<96x128xf32, #tpu.memory_space<vmem>>, %arg5: memref<1x128xf32, #tpu.memory_space<vmem>>, %arg6: memref<8x128xf32, #tpu.memory_space<vmem>>, %arg7: memref<8x128xf32, #tpu.memory_space<vmem>>) attributes {dimension_semantics = [#tpu.dimension_semantics<parallel>], iteration_bounds = array<i64: 2>, scalar_prefetch = 0 : i64, scratch_operands = 0 : i64, tpu.core_type = #tpu.core_type<tc>, window_params = [{transform_indices = @transform_0, window_bounds = array<i64: 8, 32>}, {transform_indices = @transform_1, window_bounds = array<i64: 8, 32>}, {transform_indices = @transform_2, window_bounds = array<i64: 8, 1>}, {pipeline_mode = #tpu.pipeline_mode<synchronous>, transform_indices = @transform_3, window_bounds = array<i64: 96, 128>}, {pipeline_mode = #tpu.pipeline_mode<synchronous>, transform_indices = @transform_4, window_bounds = array<i64: 1, 128>}, {transform_indices = @transform_5, window_bounds = array<i64: 8, 128>}, {transform_indices = @transform_6, window_bounds = array<i64: 8, 128>}]} {
    %c0 = arith.constant 0 : index
    %c0_0 = arith.constant 0 : index
    %0 = vector.load %arg1[%c0, %c0_0] : memref<8x32xf32, #tpu.memory_space<vmem>>, vector<8x32xf32>
    %c0_1 = arith.constant 0 : index
    %c0_2 = arith.constant 0 : index
    %1 = vector.load %arg2[%c0_1, %c0_2] : memref<8x32xf32, #tpu.memory_space<vmem>>, vector<8x32xf32>
    %c0_3 = arith.constant 0 : index
    %c0_4 = arith.constant 0 : index
    %2 = vector.load %arg3[%c0_3, %c0_4] : memref<8x1xi32, #tpu.memory_space<vmem>>, vector<8x1xi32>
    %cst = arith.constant 9.99999993E-9 : f32
    %cst_5 = arith.constant 9.99999993E-9 : f32
    %3 = arith.mulf %cst, %cst_5 : f32
    %4 = arith.mulf %0, %1 : vector<8x32xf32>
    %cst_6 = arith.constant dense<0.000000e+00> : vector<8xf32>
    %5 = vector.multi_reduction <add>, %4, %cst_6 [1] : vector<8x32xf32> to vector<8xf32>
    %6 = vector.shape_cast %5 : vector<8xf32> to vector<8x1xf32>
    %7 = arith.mulf %0, %0 : vector<8x32xf32>
    %cst_7 = arith.constant dense<0.000000e+00> : vector<8xf32>
    %8 = vector.multi_reduction <add>, %7, %cst_7 [1] : vector<8x32xf32> to vector<8xf32>
    %9 = vector.shape_cast %8 : vector<8xf32> to vector<8x1xf32>
    %10 = arith.mulf %1, %1 : vector<8x32xf32>
    %cst_8 = arith.constant dense<0.000000e+00> : vector<8xf32>
    %11 = vector.multi_reduction <add>, %10, %cst_8 [1] : vector<8x32xf32> to vector<8xf32>
    %12 = vector.shape_cast %11 : vector<8xf32> to vector<8x1xf32>
    %13 = vector.broadcast %3 : f32 to vector<8x1xf32>
    %14 = arith.maximumf %9, %13 : vector<8x1xf32>
    %15 = vector.broadcast %3 : f32 to vector<8x1xf32>
    %16 = arith.maximumf %12, %15 : vector<8x1xf32>
    %17 = arith.mulf %14, %16 : vector<8x1xf32>
    %18 = math.rsqrt %17 : vector<8x1xf32>
    %19 = arith.mulf %6, %18 : vector<8x1xf32>
    %20 = arith.subf %0, %1 : vector<8x32xf32>
    %21 = math.absf %20 : vector<8x32xf32>
    %22 = tpu.concatenate %0, %1, %21 in 1 : vector<8x32xf32>, vector<8x32xf32>, vector<8x32xf32> -> vector<8x96xf32>
    %c0_9 = arith.constant 0 : index
    %c0_10 = arith.constant 0 : index
    %23 = vector.load %arg4[%c0_9, %c0_10] : memref<96x128xf32, #tpu.memory_space<vmem>>, vector<96x128xf32>
    %cst_11 = arith.constant dense<0.000000e+00> : vector<8x128xf32>
    %24 = tpu.matmul %22, %23, %cst_11 {dimension_numbers = #tpu.dot_dimension_numbers<[1], [0], [0], [1], [0, 0, 1, 1], [], []>} : vector<8x96xf32>, vector<96x128xf32>, vector<8x128xf32> -> vector<8x128xf32>
    %c0_12 = arith.constant 0 : index
    %c0_13 = arith.constant 0 : index
    %25 = vector.load %arg5[%c0_12, %c0_13] : memref<1x128xf32, #tpu.memory_space<vmem>>, vector<1x128xf32>
    %26 = vector.broadcast %25 : vector<1x128xf32> to vector<8x128xf32>
    %27 = arith.addf %24, %26 : vector<8x128xf32>
    %c0_14 = arith.constant 0 : index
    %c0_15 = arith.constant 0 : index
    %28 = vector.load %arg6[%c0_14, %c0_15] : memref<8x128xf32, #tpu.memory_space<vmem>>, vector<8x128xf32>
    tpu.vector_store %arg6[%c0_14, %c0_15], %27 {strides = array<i32>} : memref<8x128xf32, #tpu.memory_space<vmem>>, vector<8x128xf32>,
    %cst_16 = arith.constant dense<0xFF800000> : vector<8xf32>
    %29 = vector.multi_reduction <maximumf>, %27, %cst_16 [1] : vector<8x128xf32> to vector<8xf32>
    %30 = vector.shape_cast %29 : vector<8xf32> to vector<8x1xf32>
    %31 = vector.broadcast %30 : vector<8x1xf32> to vector<8x128xf32>
    %32 = arith.subf %27, %31 : vector<8x128xf32>
    %33 = math.exp %32 : vector<8x128xf32>
    %cst_17 = arith.constant dense<0.000000e+00> : vector<8xf32>
    %34 = vector.multi_reduction <add>, %33, %cst_17 [1] : vector<8x128xf32> to vector<8xf32>
    %35 = vector.shape_cast %34 : vector<8xf32> to vector<8x1xf32>
    %36 = math.log %35 : vector<8x1xf32>
    %37 = tpu.iota {dimensions = array<i32: 1>} : vector<8x128xi32>
    %38 = vector.broadcast %2 : vector<8x1xi32> to vector<8x128xi32>
    %39 = arith.cmpi eq, %37, %38 : vector<8x128xi32>
    %cst_18 = arith.constant 0.000000e+00 : f32
    %40 = vector.broadcast %cst_18 : f32 to vector<8x128xf32>
    %41 = arith.select %39, %32, %40 : vector<8x128xi1>, vector<8x128xf32>
    %cst_19 = arith.constant dense<0.000000e+00> : vector<8xf32>
    %42 = vector.multi_reduction <add>, %41, %cst_19 [1] : vector<8x128xf32> to vector<8xf32>
    %43 = vector.shape_cast %42 : vector<8xf32> to vector<8x1xf32>
    %44 = arith.subf %36, %43 : vector<8x1xf32>
    %45 = tpu.iota {dimensions = array<i32: 1>} : vector<8x128xi32>
    %c0_i32 = arith.constant 0 : i32
    %46 = vector.broadcast %c0_i32 : i32 to vector<8x128xi32>
    %47 = arith.cmpi eq, %45, %46 : vector<8x128xi32>
    %cst_20 = arith.constant 0.000000e+00 : f32
    %48 = vector.shape_cast %19 : vector<8x1xf32> to vector<8x1xf32>
    %49 = vector.broadcast %48 : vector<8x1xf32> to vector<8x128xf32>
    %50 = vector.broadcast %cst_20 : f32 to vector<8x128xf32>
    %51 = arith.select %47, %49, %50 : vector<8x128xi1>, vector<8x128xf32>
    %c1_i32 = arith.constant 1 : i32
    %52 = vector.broadcast %c1_i32 : i32 to vector<8x128xi32>
    %53 = arith.cmpi eq, %45, %52 : vector<8x128xi32>
    %cst_21 = arith.constant 0.000000e+00 : f32
    %54 = vector.shape_cast %44 : vector<8x1xf32> to vector<8x1xf32>
    %55 = vector.broadcast %54 : vector<8x1xf32> to vector<8x128xf32>
    %56 = vector.broadcast %cst_21 : f32 to vector<8x128xf32>
    %57 = arith.select %53, %55, %56 : vector<8x128xi1>, vector<8x128xf32>
    %58 = arith.addf %51, %57 : vector<8x128xf32>
    %c0_22 = arith.constant 0 : index
    %c0_23 = arith.constant 0 : index
    %59 = vector.load %arg7[%c0_22, %c0_23] : memref<8x128xf32, #tpu.memory_space<vmem>>, vector<8x128xf32>
    tpu.vector_store %arg7[%c0_22, %c0_23], %58 {strides = array<i32>} : memref<8x128xf32, #tpu.memory_space<vmem>>, vector<8x128xf32>,
    return
  }
  func.func @transform_0(%arg0: i32) -> (i32, i32) {
    %c0_i32 = arith.constant 0 : i32
    %c0_i32_0 = arith.constant 0 : i32
    return %arg0, %c0_i32 : i32, i32
  }
  func.func @transform_1(%arg0: i32) -> (i32, i32) {
    %c0_i32 = arith.constant 0 : i32
    %c0_i32_0 = arith.constant 0 : i32
    return %arg0, %c0_i32 : i32, i32
  }
  func.func @transform_2(%arg0: i32) -> (i32, i32) {
    %c0_i32 = arith.constant 0 : i32
    %c0_i32_0 = arith.constant 0 : i32
    return %arg0, %c0_i32 : i32, i32
  }
  func.func @transform_3(%arg0: i32) -> (i32, i32) {
    %c0_i32 = arith.constant 0 : i32
    %c0_i32_0 = arith.constant 0 : i32
    %c0_i32_1 = arith.constant 0 : i32
    return %c0_i32, %c0_i32_0 : i32, i32
  }
  func.func @transform_4(%arg0: i32) -> (i32, i32) {
    %c0_i32 = arith.constant 0 : i32
    %c0_i32_0 = arith.constant 0 : i32
    %c0_i32_1 = arith.constant 0 : i32
    return %c0_i32, %c0_i32_0 : i32, i32
  }
  func.func @transform_5(%arg0: i32) -> (i32, i32) {
    %c0_i32 = arith.constant 0 : i32
    %c0_i32_0 = arith.constant 0 : i32
    return %arg0, %c0_i32 : i32, i32
  }
  func.func @transform_6(%arg0: i32) -> (i32, i32) {
    %c0_i32 = arith.constant 0 : i32
    %c0_i32_0 = arith.constant 0 : i32
    return %arg0, %c0_i32 : i32, i32
  }
}

</mosaic_0001>

<bundles_post_ra>
// kernel: tpu_custom_call.1
= control target key start
LH: loop header
LB: loop body
LE: loop exit
PB: predicated region body
PF: predicated region fallthrough
CT: control target
= control target key end

     0   :  { %s1205_s0 = inlined_call_operand.vmem [shape: f32[16,32], index: 0, kind: input, shape index: {}]   ;;  %s1206_s1 = inlined_call_operand.hbm [shape: f32[16,32], index: 1, kind: input, shape index: {}]   ;;  %s1207_s2 = inlined_call_operand.vmem [shape: s32[16,1], index: 2, kind: input, shape index: {}]   ;;  %s1208_s3 = inlined_call_operand.hbm [shape: f32[96,128], index: 3, kind: input, shape index: {}]   ;;  %s1209_s4 = inlined_call_operand.vmem [shape: f32[1,128], index: 4, kind: input, shape index: {}]   ;;  %s1210_s5 = inlined_call_operand.hbm [shape: f32[16,128], index: 5, kind: output, shape index: {0}]   ;;  %s1211_s6 = inlined_call_operand.hbm [shape: f32[16,128], index: 6, kind: output, shape index: {1}]  }
   0x1   :  { %1216 = sst [smem:[#allocation14_spill]] %s1208_s3 }
   0x2   :  { %12 = vsyncpa [#allocation3], 0 }
   0x3   :  { %14 = vsyncpa [#allocation3 + $0x1], 0 }
   0x4   :  { %15 = vsyncpa [#allocation6], 0 }
   0x5   :  { %16 = vsyncpa [#allocation4], 0 }
   0x6   :  { %18 = vsyncpa [#allocation4 + $0x1], 0 }
   0x7   :  { %19 = vsyncpa [#allocation9], 0 }
   0x8   :  { %21 = vsyncpa [#allocation9 + $0x1], 0  ;;  %s986_s21 = smov 0   ;;  %s988_s22 = smov 0  }
   0x9   :  { %s990_s23 = smov 0   ;;  %s992_s24 = smov 0  }
   0xa LB: > { %s1007_s25 = sadd.s32 4294967295, %s938_s24   ;;  %s648_s26 = sadd.s32 4294967294, %s938_s24   ;;  %s938_s24 = sphi %s992_s24, %s1235_s24   ;;  %s934_s23 = sphi %s990_s23, %s1234_s23   ;;  %s930_s22 = sphi %s988_s22, %s1233_s22   ;;  %s926_s21 = sphi %s986_s21, %s1232_s21  }
   0xb   : > { %p73_p0 = scmp.ne.s32.totalorder %s930_s22, %s926_s21  ;;  %p1212_p1 = scmp.eq.s32.totalorder %s1007_s25, 0 }
   0xc   : > { %p171_p3 = scmp.eq.s32.totalorder %s648_s26, 1  ;;  %p649_p5 = scmp.ge.s32.totalorder %s938_s24, 1 }
   0xd   : > { %p1016_p4 = por %p1212_p1, %p73_p0  ;;  %p204_p7 = scmp.lt.s32.totalorder %s938_s24, 3 }
   0xe   : > { %p1021_p6 = por %p171_p3, %p73_p0  ;;  %s940_s30 = smov [#allocation5]  }
   0xf   : > { %s1217_s27 = scalar_select %p1016_p4, 1, 0 }
  0x10   : > { %s1218_s28 = scalar_select %p1021_p6, 1, 0 }
  0x11   : > { %p1026_p8 = pnand %p649_p5, %p204_p7  ;;  %s216_s7 = sshll.u32 %s940_s30, 4  ;;  %s217_s7 = int_to_ptr.vmem [resolvable:$true] %s216_s7 }
  0x12   : > { %s1040_s9 = sadd.s32 1, %s938_s24   ;;  %s60_s10 = sadd.s32 1, %s934_s23 }
  0x13   : > { %s1219_s29 = scalar_select %p1026_p8, 1, 0 }
  0x14   : > { %p719_p9 = pneg %p1026_p8  ;;  %s57_s11 = ssub.s32 %s938_s24, %s1040_s9 }
  0x15   : > { %s797_s12 = scalar_lea.vmem %s217_s7, 1536  ;;  %p805_p5 = scmp.lt.s32.totalorder %s217_s7, %s217_s7 }
  0x16   : > { %p1035_p11 = pnand %p719_p9, %p1212_p1  ;;  %p798_p13 = scmp.ne.s32.totalorder %s217_s7, %s797_s12 }
  0x17   : > { %p806_p7 = scmp.lt.s32.totalorder %s797_s12, %s797_s12 }
  0x18   : > { %p788_p12 = pneg %p1035_p11 }
  0x19   : > { %p807_p10 = por %p806_p7, %p805_p5 }
  0x1a   : > { %p800_p0 = pnand %p798_p13, %p788_p12 }
  0x1c   : > { %p801_p3 = pneg %p800_p0 }
  0x1e   : > { %p808_p2 = pnand %p807_p10, %p801_p3 }
  0x20   : > { %811 = shalt.err (!%p808_p2)
}
  0x21   : > { %s941_s13 = smov 128   ;;  %s942_s14 = smov 8  }
  0x22   : > { %s1221_s3 = sld [smem:[#allocation14_spill]]  ;;  %p58_p9 = scmp.eq.s32.totalorder %s57_s11, 0 }
  0x23   : > { %p67_p12 = scmp.ne.s32.totalorder %s934_s23, %s930_s22  ;;  %p68_p10 = scmp.eq.s32.totalorder %s938_s24, 0 }
  0x24   : > { %p735_p2 = scmp.lt.s32.totalorder %s938_s24, 2  ;;  %p1222_p0 = scmp.eq.s32.totalorder %s1007_s25, 1 }
  0x25   : > { %s1057_s17 = scalar_select %p58_p9, %s934_s23, %s60_s10  }
  0x26   : > { %p69_p13 = por %p68_p10, %p67_p12  ;;  %p1061_p3 = por %p1222_p0, %p67_p12 }
  0x27   : > { %s240_s19 = sand.u32 1, %s934_s23   ;;  %s653_s20 = sshll.u32 %s938_s24, 7 }
  0x28   : > { %722 = dma.hbm_to_vmem [thread:$0]  (!%p1035_p11), %s1221_s3, 1536, %s217_s7, [#allocation6], %s941_s13, %s941_s13, %s942_s14  }
  0x29   : > { %s1223_s18 = scalar_select %p1061_p3, 1, 0 }
  0x2a   : > { %s652_s26 = sshll.u32 %s240_s19, 3  ;;  %s1070_s12 = scalar_lea.hbm %s1206_s1, %s653_s20 }
  0x2b   : > { %s244_s7 = scalar_lea.vmem [#allocation2], %s652_s26  ;;  %p1072_p11 = pnand %p735_p2, %p69_p13 }
  0x2c   : > { %s251_s10 = sshll.u32 %s244_s7, 4  ;;  %s241_s13 = scalar_lea.sflag [#allocation3], %s240_s19  ;;  %s252_s10 = int_to_ptr.vmem [resolvable:$true] %s251_s10 }
  0x2d   : > { %s812_s14 = scalar_lea.hbm %s1070_s12, 128  ;;  %p814_p7 = pneg %p1072_p11 }
  0x2e   : > { %p813_p5 = scmp.ne.s32.totalorder %s1070_s12, %s812_s14  ;;  %s817_s20 = scalar_lea.hbm %s1206_s1, 256 }
  0x2f   : > { %p818_p10 = scmp.lt.s32.totalorder %s1070_s12, %s1206_s1  ;;  %p819_p2 = scmp.lt.s32.totalorder %s817_s20, %s812_s14 }
  0x30   : > { %p815_p9 = pnand %p814_p7, %p813_p5 }
  0x31   : > { %p820_p13 = por %p819_p2, %p818_p10 }
  0x32   : > { %p816_p12 = pneg %p815_p9 }
  0x34   : > { %p821_p0 = pnand %p820_p13, %p816_p12 }
  0x36   : > { %824 = shalt.err (!%p821_p0)
}
  0x37   : > { %s825_s8 = scalar_lea.vmem %s252_s10, 128  ;;  %s943_s19 = smov [#allocation2]  }
  0x38   : > { %p826_p1 = scmp.ne.s32.totalorder %s252_s10, %s825_s8  ;;  %s830_s7 = sshll.u32 %s943_s19, 4  ;;  %s831_s7 = int_to_ptr.vmem [resolvable:$false] %s830_s7 }
  0x39   : > { %s832_s3 = scalar_lea.vmem %s831_s7, 256  ;;  %p833_p5 = scmp.lt.s32.totalorder %s252_s10, %s831_s7 }
  0x3a   : > { %p828_p6 = pnand %p826_p1, %p814_p7  ;;  %p834_p9 = scmp.lt.s32.totalorder %s832_s3, %s825_s8 }
  0x3c   : > { %p829_p3 = pneg %p828_p6  ;;  %p835_p4 = por %p834_p9, %p833_p5 }
  0x3e   : > { %p836_p8 = pnand %p835_p4, %p829_p3 }
  0x40   : > { %839 = shalt.err (!%p836_p8)
}
  0x41   : > { %726 = dma.hbm_to_vmem [thread:$0]  (!%p1072_p11), %s1070_s12, 128, %s252_s10, %s241_s13  }
  0x42   : > { %p1225_p12 = scmp.ne.s32.totalorder %s1219_s29, 0 }
  0x43   : > { %s1093_s14 = sand.u32 (!%p1225_p12), 1, %s930_s22   ;;  %p1226_p1 = scmp.ne.s32.totalorder (!%p1225_p12), %s1217_s27, 0 }
  0x44   : > { %267 = sbr.rel (%p1225_p12) target bundleno = 727 (0x2d7), region = 40  ;;  %s1096_s15 = sshll.u32 (!%p1225_p12), %s1093_s14, 3 }
  0x45   : > { %s270_s3 = scalar_lea.sflag (!%p1225_p12), [#allocation3], %s1093_s14  ;;  %s273_s16 = scalar_lea.vmem (!%p1225_p12), [#allocation2], %s1096_s15 }
  0x49   : > { %909 = dma.done.wait (%p1226_p1), %s270_s3, 128  }
  0x4a   : > { %911 = vsyncadd (%p1226_p1), %s270_s3, 4294967168  ;;  %p1227_p4 = scmp.eq.s32.totalorder %s1007_s25, 0 }
  0x4c   : > { %913 = dma.done.wait (%p1227_p4), [#allocation6], 1536   ;;  %p1228_p6 = pmov %p1227_p4 }
  0x4d   : > { %p319_p8 = scmp.lt.s32.totalorder %s1007_s25, 1  ;;  %v944_v0 = vmov 0.0   ;;  %vm945_vm0 = vmmov 0   ;;  %v1118_v1 = vld [vmem:[%s273_s16] sm:$0xff]  ;;  %s946_s13 = smov 32   ;;  %v370_v6 = vld [vmem:[#allocation5 + $0x48] sm:$0xff]  ;;  %v464_v34 = vlaneseq }
  0x4e   : > { %915 = vsyncadd (%p1228_p6), [#allocation6], 4294965760  ;;  %682 = vmatprep.subr.mxu0 %v944_v0  ;;  %706 = vmatprep.mubr.msk.f32.mxu0 %vm945_vm0, %v944_v0  ;;  %v372_v3 = vld [vmem:[#allocation5 + $0x58] sm:$0xff]  ;;  %v371_v5 = vld [vmem:[#allocation5 + $0x50] sm:$0xff]  ;;  %s947_s20 = smov 64   ;;  %vm331_vm1 = vcmask 261120   ;;  %v339_v29 = vmul.f32 %v1118_v1, %v1118_v1 }
  0x4f   : > { %s1110_s29 = scalar_select %p319_p8, %s1007_s25, 1  ;;  %351 = vrot.lane.b32.xlu0 %v1118_v1, %s946_s13  ;;  %683 = vmatpush3.msra.mxu0 %v372_v3  ;;  %v369_v8 = vld [vmem:[#allocation5 + $0x40] sm:$0xff]  ;;  %v368_v9 = vld [vmem:[#allocation5 + $0x38] sm:$0xff]  ;;  %v367_v10 = vld [vmem:[#allocation5 + $0x30] sm:$0xff]  ;;  %vm359_vm2 = vcmask 523264   ;;  %vm380_vm3 = vcmask 785408  }
  0x50   : > { %684 = vmatprep.subr.mxu0 %v944_v0  ;;  %v366_v11 = vld [vmem:[#allocation5 + $0x28] sm:$0xff]  ;;  %v365_v12 = vld [vmem:[#allocation5 + $0x20] sm:$0xff]  ;;  %v364_v13 = vld [vmem:[#allocation5 + $0x18] sm:$0xff]  ;;  %v948_v21 = vmov 0   ;;  %s311_s8 = scalar_lea.vmem [#allocation7], %s1096_s15  ;;  %v340_v30 = vsel %vm331_vm1, %v339_v29, 0.0 }
  0x51   : > { %s659_s12 = sshll.u32 %s1110_s29, 3  ;;  %685 = vmatpush3.msra.mxu0 %v371_v5  ;;  %v363_v14 = vld [vmem:[#allocation5 + $0x10] sm:$0xff]  ;;  %v362_v15 = vld [vmem:[#allocation5 + $0x8] sm:$0xff]  ;;  %v361_v16 = vld [vmem:[#allocation5] sm:$0xff]  ;;  %778 = vset.pattern.permute.xlu1 %v948_v21  ;;  %v465_v37 = vand.u32 127, %v464_v34  ;;  %s665_s16 = sshll.u32 %s1007_s25, 7 }
  0x52   : > { %s322_s11 = scalar_lea.vmem %s1205_s0, %s659_s12  ;;  %686 = vmatprep.subr.mxu0 %v944_v0  ;;  %779 = vset.pattern.permute.xlu0 %v948_v21  ;;  %v661_v22 = vld [vmem:[%s1209_s4] ss:$0 sm:$0xff]  ;;  %s326_s3 = scalar_lea.vmem %s1207_s2, %s659_s12 }
  0x53   : > { %v1120_v2 = vld [vmem:[%s322_s11] sm:$0xff]  ;;  %687 = vmatpush3.msra.mxu0 %v370_v6  ;;  %s497_s27 = scalar_lea.hbm %s1210_s5, %s665_s16  ;;  %s499_s10 = sshll.u32 %s311_s8, 4  ;;  %s500_s10 = int_to_ptr.vmem [resolvable:$true] %s499_s10 }
  0x54   : > { %v348_v4 = vsub.f32 %v1120_v2, %v1118_v1  ;;  %688 = vmatprep.subr.mxu0 %v944_v0  ;;  %v329_v26 = vld [vmem:[%s326_s3] sm:$0xff]  ;;  %v335_v27 = vmul.f32 %v1120_v2, %v1120_v2  ;;  %v330_v35 = vmul.f32 %v1118_v1, %v1120_v2  ;;  %s481_s11 = scalar_lea.sflag [#allocation4], %s1093_s14  ;;  %s840_s13 = scalar_lea.vmem %s500_s10, 128 }
  0x55   : > { %689 = vmatpush3.msra.mxu0 %v369_v8  ;;  %p841_p3 = scmp.ne.s32.totalorder %s500_s10, %s840_s13  ;;  %p1229_p11 = scmp.ne.s32.totalorder %s1223_s18, 0 }
  0x56   : > { %v349_v7 = vand.u32 2147483647, %v348_v4  ;;  %690 = vmatprep.subr.mxu0 %v944_v0  ;;  %v336_v28 = vsel %vm331_vm1, %v335_v27, 0.0  ;;  %v332_v39 = vsel %vm331_vm1, %v330_v35, 0.0 }
  0x57   : > { %691 = vmatpush3.msra.mxu0 %v368_v9  ;;  %p842_p7 = pnand %p841_p3, %p1229_p11 }
  0x58   : > { %355 = vrot.lane.b32.xlu0 %v349_v7, %s947_s20  ;;  %692 = vmatprep.subr.mxu0 %v944_v0  ;;  %s949_s20 = smov [#allocation7]  }
  0x59   : > { %693 = vmatpush3.msra.mxu0 %v367_v10  ;;  %p843_p10 = pneg %p842_p7  ;;  %s844_s30 = sshll.u32 %s949_s20, 4  ;;  %s845_s30 = int_to_ptr.vmem [resolvable:$false] %s844_s30 }
  0x5a   : > { %694 = vmatprep.subr.mxu0 %v944_v0  ;;  %s846_s26 = scalar_lea.vmem %s845_s30, 256  ;;  %p847_p2 = scmp.lt.s32.totalorder %s500_s10, %s845_s30 }
  0x5b   : > { %695 = vmatpush3.msra.mxu0 %v366_v11  ;;  %p848_p13 = scmp.lt.s32.totalorder %s846_s26, %s840_s13 }
  0x5c   : > { %696 = vmatprep.subr.mxu0 %v944_v0 }
  0x5d   : > { %697 = vmatpush3.msra.mxu0 %v365_v12  ;;  %p849_p0 = por %p848_p13, %p847_p2 }
  0x5e   : > { %698 = vmatprep.subr.mxu0 %v944_v0 }
  0x5f   : > { %699 = vmatpush3.msra.mxu0 %v364_v13  ;;  %p850_p5 = pnand %p849_p0, %p843_p10 }
  0x60   : > { %700 = vmatprep.subr.mxu0 %v944_v0 }
  0x61   : > { %701 = vmatpush3.msra.mxu0 %v363_v14 }
  0x62   : > { %702 = vmatprep.subr.mxu0 %v944_v0 }
  0x63   : > { %703 = vmatpush3.msra.mxu0 %v362_v15 }
  0x64   : > { %704 = vmatprep.subr.mxu0 %v944_v0 }
  0x65   : > { %705 = vmatpush3.msra.mxu0 %v361_v16 }
  0x77   : > { %337 = vadd.xlane.f32.xlu0 %v336_v28 }
  0xc1   : > { %v352_v17 = vpop.permute.xlu0 %351 }
  0xc2   : > { %v358_v18 = vsel %vm331_vm1, %v1120_v2, %v352_v17 }
  0xca   : > { %v356_v19 = vpop.permute.xlu0 %355 }
  0xcb   : > { %v360_v20 = vsel %vm359_vm2, %v358_v18, %v356_v19 }
  0xcc   : > { %707 = vmatmul.mubr.msk.f32.vlgmr.msra.gmra.mxu0 %vm380_vm3, %v360_v20 }
 0x18c   : > { %v450_v23 = vpop.f32.mrf.mxu0 }
 0x18d   : > { %v451_v24 = vadd.f32 %v661_v22, %v450_v23 }
 0x18e   : > { %v708_v25 = vpop.f32.mrf.mxu0 }
 0x18f   : > { %454 = vst [vmem:[%s311_s8] sm:$0xff] %v451_v24  ;;  %455 = vmax.xlane.f32.xlu1 %v451_v24 }
 0x1a0   : > { %467 = vperm.xlu1 %778, %v329_v26  }
 0x1c4   : > { %341 = vadd.xlane.f32.xlu1 %v340_v30 }
 0x218   : > { %v456_v31 = vpop.xlane.xlu1 %455 }
 0x219   : > { %v457_v32 = vsub.f32 %v451_v24, %v456_v31 }
 0x21b   : > { %v458_v33 = vmul.f32 1.442695, %v457_v32 }
 0x21c   : > { %v468_v38 = vpop.permute.xlu1 %467 }
 0x21d   : > { %780 = vpow2.f32 %v458_v33  ;;  %vm469_vm4 = vcmp.eq.s32.totalorder %v465_v37, %v468_v38 }
 0x21e   : > { %v470_v40 = vsel %vm469_vm4, %v457_v32, 0.0 }
 0x22a   : > { %v781_v36 = vpop.eup %780 }
 0x22b   : > { %460 = vadd.xlane.f32.xlu0 %v781_v36 }
 0x22f   : > { %333 = vadd.xlane.f32.xlu0 %v332_v39 }
 0x233   : > { %471 = vadd.xlane.f32.xlu0 %v470_v40 }
 0x234   : > { %853 = shalt.err (!%p850_p5)
}
 0x235   : > { %s854_s19 = scalar_lea.hbm %s497_s27, 128  ;;  %s858_s3 = scalar_lea.hbm %s1210_s5, 256 }
 0x236   : > { %p855_p9 = scmp.ne.s32.totalorder %s497_s27, %s854_s19  ;;  %p859_p4 = scmp.lt.s32.totalorder %s497_s27, %s1210_s5 }
 0x237   : > { %p860_p6 = scmp.lt.s32.totalorder %s858_s3, %s854_s19 }
 0x238   : > { %p856_p12 = pnand %p855_p9, %p1229_p11 }
 0x239   : > { %p861_p8 = por %p860_p6, %p859_p4 }
 0x23a   : > { %p857_p1 = pneg %p856_p12 }
 0x23c   : > { %p862_p3 = pnand %p861_p8, %p857_p1 }
 0x23e   : > { %865 = shalt.err (!%p862_p3)
}
 0x23f   : > { %715 = dma.vmem_to_hbm [thread:$0]  (%p1229_p11), %s500_s10, 128, %s497_s27, %s481_s11   ;;  %v338_v42 = vpop.xlane.xlu0 %337  ;;  %vm474_vm5 = vcmp.eq.s32.totalorder %v465_v37, 0  ;;  %vm476_vm6 = vcmp.eq.s32.totalorder %v465_v37, 1 }
 0x240   : > { %v343_v44 = vmax.f32 %v338_v42, 1e-16  ;;  %s318_s27 = scalar_lea.vmem [#allocation8], %s1096_s15  ;;  %s510_s20 = scalar_lea.hbm %s1211_s6, %s665_s16 }
 0x241   : > { %s512_s10 = sshll.u32 %s318_s27, 4  ;;  %s486_s30 = scalar_lea.sflag [#allocation9], %s1093_s14  ;;  %s513_s10 = int_to_ptr.vmem [resolvable:$true] %s512_s10 }
 0x242   : > { %s866_s26 = scalar_lea.vmem %s513_s10, 128  ;;  %s950_s19 = smov [#allocation8]  }
 0x243   : > { %p867_p7 = scmp.ne.s32.totalorder %s513_s10, %s866_s26  ;;  %s870_s8 = sshll.u32 %s950_s19, 4  ;;  %s871_s8 = int_to_ptr.vmem [resolvable:$false] %s870_s8 }
 0x244   : > { %s872_s15 = scalar_lea.vmem %s871_s8, 256  ;;  %p873_p13 = scmp.lt.s32.totalorder %s513_s10, %s871_s8 }
 0x245   : > { %p868_p10 = pnand %p867_p7, %p1229_p11  ;;  %p874_p0 = scmp.lt.s32.totalorder %s872_s15, %s866_s26 }
 0x247   : > { %p869_p2 = pneg %p868_p10  ;;  %p875_p5 = por %p874_p0, %p873_p13 }
 0x249   : > { %p876_p9 = pnand %p875_p5, %p869_p2 }
 0x24d   : > { %v342_v41 = vpop.xlane.xlu1 %341 }
 0x24e   : > { %v344_v43 = vmax.f32 %v342_v41, 1e-16 }
 0x250   : > { %v345_v45 = vmul.f32 %v344_v43, %v343_v44 }
 0x252   : > { %782 = vrsqrt.f32 %v345_v45 }
 0x25f   : > { %v783_v48 = vpop.eup %782 }
 0x2b4   : > { %v461_v46 = vpop.xlane.xlu0 %460 }
 0x2b5   : > { %784 = vlog2.f32 %v461_v46 }
 0x2b8   : > { %v334_v47 = vpop.xlane.xlu0 %333 }
 0x2b9   : > { %v347_v50 = vmul.f32 %v783_v48, %v334_v47 }
 0x2bb   : > { %v475_v54 = vsel %vm474_vm5, %v347_v50, 0.0 }
 0x2bc   : > { %v472_v52 = vpop.xlane.xlu0 %471 }
 0x2c2   : > { %v785_v49 = vpop.eup %784 }
 0x2c3   : > { %v463_v51 = vmul.f32 0.6931472, %v785_v49 }
 0x2c5   : > { %v473_v53 = vsub.f32 %v463_v51, %v472_v52 }
 0x2c7   : > { %v477_v55 = vsel %vm476_vm6, %v473_v53, 0.0 }
 0x2c8   : > { %v478_v56 = vadd.f32 %v477_v55, %v475_v54 }
 0x2ca   : > { %479 = vst [vmem:[%s318_s27] sm:$0xff] %v478_v56 }
 0x2cb   : > { %879 = shalt.err (!%p876_p9)
}
 0x2cc   : > { %s880_s25 = scalar_lea.hbm %s510_s20, 128  ;;  %s884_s7 = scalar_lea.hbm %s1211_s6, 256 }
 0x2cd   : > { %p881_p12 = scmp.ne.s32.totalorder %s510_s20, %s880_s25  ;;  %p885_p6 = scmp.lt.s32.totalorder %s510_s20, %s1211_s6 }
 0x2ce   : > { %p886_p8 = scmp.lt.s32.totalorder %s884_s7, %s880_s25 }
 0x2cf   : > { %p882_p1 = pnand %p881_p12, %p1229_p11 }
 0x2d0   : > { %p887_p3 = por %p886_p8, %p885_p6 }
 0x2d1   : > { %p883_p4 = pneg %p882_p1 }
 0x2d3   : > { %p888_p7 = pnand %p887_p3, %p883_p4 }
 0x2d5   : > { %891 = shalt.err (!%p888_p7)
}
 0x2d6   : > { %716 = dma.vmem_to_hbm [thread:$0]  (%p1229_p11), %s513_s10, 128, %s510_s20, %s486_s30  }
 0x2d7 PF: > { %s524_s12 = sand.u32 1, %s926_s21   ;;  %p1230_p10 = scmp.ne.s32.totalorder %s1218_s28, 0 }
 0x2d8   : > { %p1231_p2 = scmp.ge.s32.totalorder %s938_s24, 2  ;;  %s525_s27 = scalar_lea.sflag [#allocation4], %s524_s12 }
 0x2da   : > { %p728_p13 = pnand %p1231_p2, %p1230_p10 }
 0x2dc   : > { %p729_p0 = pneg %p728_p13 }
 0x2de   : > { %917 = dma.done.wait (%p729_p0), %s525_s27, 128  }
 0x2df   : > { %919 = vsyncadd (%p729_p0), %s525_s27, 4294967168  ;;  %s534_s11 = scalar_lea.sflag [#allocation9], %s524_s12 }
 0x2e0   : > { %921 = dma.done.wait (%p729_p0), %s534_s11, 128  }
 0x2e1   : > { %923 = vsyncadd (%p729_p0), %s534_s11, 4294967168  ;;  %p24_p11 = scmp.ge.s32.totalorder %s1040_s9, 4   ;;  %s1232_s21 = smov %s930_s22 }
 0x2e2   : > { %s1233_s22 = smov %s934_s23  ;;  %s1234_s23 = smov %s1057_s17 }
 0x2e3   : > { %s1235_s24 = smov %s1040_s9  ;;  %26 = sbr.rel (!%p24_p11) target bundleno = 10 (0xa), region = 112 }
 0x2e8   :  { %539 = vsyncpa [#allocation3], 1 }
 0x2e9   :  { %541 = vsyncpa [#allocation3 + $0x1], 1 }
 0x2ea   :  { %542 = vsyncpa [#allocation6], 1 }
 0x2eb   :  { %543 = vsyncpa [#allocation4], 1 }
 0x2ec   :  { %545 = vsyncpa [#allocation4 + $0x1], 1 }
 0x2ed   :  { %546 = vsyncpa [#allocation9], 1 }
 0x2ee   :  { %548 = vsyncpa [#allocation9 + $0x1], 1 }

</bundles_post_ra>
